<compile_context>
chip_gen: v6e
topology: v6e:2x2x1
jax: 0.10.0
libtpu: 0.0.40
codegen_flags: <defaults>
</compile_context>

<pallas_src>
import functools

import jax
import jax.numpy as jnp
from jax.experimental import pallas as pl
from jax.experimental.pallas import tpu as pltpu


def _round_up(v, m):
    return (v + m - 1) // m * m


def _pick_tile(n, candidates):
    for c in candidates:
        if c <= n and n % c == 0:
            return c
    return n


def sage_conv_kernel(a_ref, xk_ref, xrow_ref, w_ref, b_ref, o_ref, feat_ref,
                     *, apply_relu):
    """One (row-tile, k-tile) grid step of a SAGEConv layer.

    feat_ref: (tile_n, 2*Fin) f32 scratch.  Left half = root features,
    right half = running neighbor-mean accumulation.
    """
    k = pl.program_id(1)
    fin = xk_ref.shape[1]

    # K-tiled neighbor aggregation on the MXU (bf16 in, f32 accumulate).
    agg = jnp.dot(a_ref[...], xk_ref[...], preferred_element_type=jnp.float32)

    @pl.when(k == 0)
    def _init():
        feat_ref[:, :fin] = xrow_ref[...].astype(jnp.float32)
        feat_ref[:, fin:] = agg          # skip zero-init + read-add of zeros

    @pl.when(k > 0)
    def _accumulate():
        feat_ref[:, fin:] += agg

    @pl.when(k == pl.num_programs(1) - 1)
    def _finalize():
        # Single fused projection: [x_root | agg] @ [W_root; W_neigh] + b.
        out = jnp.dot(feat_ref[...].astype(w_ref.dtype), w_ref[...],
                      preferred_element_type=jnp.float32)
        out = out + b_ref[...]
        if apply_relu:
            out = jnp.maximum(out, 0.0)
        o_ref[...] = out.astype(o_ref.dtype)


def sage_conv(x, a_mean, w_comb, bias, *, apply_relu, out_dtype,
              tile_n=None, tile_k=None):
    """out = x @ W_root + (A_mean @ x) @ W_neigh + b  (padded, bf16 inputs).

    x:      (Np, Fin_p)       bf16
    a_mean: (Np, Np)          bf16
    w_comb: (2*Fin_p, Fout_p) bf16   (stacked [W_root; W_neigh])
    bias:   (1, Fout_p)       f32
    """
    n, fin = x.shape
    two_fin, fout = w_comb.shape
    assert two_fin == 2 * fin
    assert a_mean.shape == (n, n)
    assert n % 128 == 0 and fin % 128 == 0 and fout % 128 == 0

    tile_n = tile_n or _pick_tile(n, (512, 256, 128))
    tile_k = tile_k or _pick_tile(n, (1024, 512, 256, 128))
    grid = (n // tile_n, n // tile_k)

    out_itemsize = jnp.dtype(out_dtype).itemsize
    cost = pl.CostEstimate(
        flops=2 * n * n * fin + 2 * n * two_fin * fout,
        transcendentals=0,
        bytes_accessed=int(
            a_mean.size * a_mean.dtype.itemsize
            + (grid[0] + 1) * x.size * x.dtype.itemsize  # k-stream re-read per row tile + root rows
            + w_comb.size * w_comb.dtype.itemsize
            + bias.size * bias.dtype.itemsize
            + n * fout * out_itemsize))

    kernel = functools.partial(sage_conv_kernel, apply_relu=apply_relu)
    return pl.pallas_call(
        kernel,
        out_shape=jax.ShapeDtypeStruct((n, fout), out_dtype),
        grid_spec=pltpu.PrefetchScalarGridSpec(
            num_scalar_prefetch=0,
            grid=grid,
            in_specs=[
                pl.BlockSpec((tile_n, tile_k), lambda i, k: (i, k)),   # A_mean tile
                pl.BlockSpec((tile_k, fin), lambda i, k: (k, 0)),      # X k-block
                pl.BlockSpec((tile_n, fin), lambda i, k: (i, 0)),      # X row-block (root term)
                pl.BlockSpec((two_fin, fout), lambda i, k: (0, 0)),    # [W_root; W_neigh]
                pl.BlockSpec((1, fout), lambda i, k: (0, 0)),          # bias
            ],
            out_specs=pl.BlockSpec((tile_n, fout), lambda i, k: (i, 0)),
            scratch_shapes=[pltpu.VMEM((tile_n, two_fin), jnp.float32)],
        ),
        compiler_params=pltpu.CompilerParams(
            dimension_semantics=("parallel", "arbitrary"),
            vmem_limit_bytes=32 * 1024 * 1024),
        cost_estimate=cost,
    )(a_mean, x, x, w_comb, bias)


def build_mean_adjacency(edge_index, num_nodes):
    """Dense row-normalized adjacency: A_mean[i, j] = (#edges j->i)/deg_in(i)."""
    src, dst = edge_index[0], edge_index[1]
    # .add (not .set) so parallel/duplicate edges are counted — matches PyG
    # SAGEConv scatter-mean over per-edge messages.
    a = jnp.zeros((num_nodes, num_nodes), jnp.float32).at[dst, src].add(1.0)
    deg = a.sum(axis=1, keepdims=True)
    return a / jnp.maximum(deg, 1.0)


def init_graphsage_params(key, in_channels, hidden_channels, out_channels,
                          num_layers=2):
    dims = [in_channels] + [hidden_channels] * (num_layers - 1) + [out_channels]
    params = []
    for li in range(num_layers):
        fin, fout = dims[li], dims[li + 1]
        key, k1, k2 = jax.random.split(key, 3)
        scale = 1.0 / jnp.sqrt(jnp.float32(fin))
        w_root = jax.random.normal(k1, (fin, fout), jnp.float32) * scale
        w_neigh = jax.random.normal(k2, (fin, fout), jnp.float32) * scale
        bias = jnp.zeros((fout,), jnp.float32)
        params.append((w_root, w_neigh, bias))
    return params


def _prep_layer_params(w_root, w_neigh, bias, fin_p, fout_p):
    """Zero-pad to (fin_p, fout_p), stack [W_root; W_neigh], cast to bf16."""
    fin, fout = w_root.shape
    wr = jnp.zeros((fin_p, fout_p), jnp.float32).at[:fin, :fout].set(w_root)
    wn = jnp.zeros((fin_p, fout_p), jnp.float32).at[:fin, :fout].set(w_neigh)
    w_comb = jnp.concatenate([wr, wn], axis=0).astype(jnp.bfloat16)
    b = jnp.zeros((1, fout_p), jnp.float32).at[0, :fout].set(bias.reshape(-1))
    return w_comb, b


def graphsage_forward(x, edge_index, params):
    """GraphSAGE forward (inference: F.dropout(training=False) is identity)."""
    n, fin = x.shape
    fout_final = params[-1][0].shape[1]

    # Pad node count / feature dims to multiples of 128 for lane-dense MXU
    # operands and unmasked stores; padding is zero and sliced off at the end.
    n_p = _round_up(n, 128)
    fin_p = _round_up(fin, 128)

    a_mean = build_mean_adjacency(edge_index, n)
    a_pad = jnp.zeros((n_p, n_p), jnp.float32).at[:n, :n].set(a_mean)
    a_pad = a_pad.astype(jnp.bfloat16)

    h = jnp.zeros((n_p, fin_p), jnp.float32).at[:n, :fin].set(x)
    h = h.astype(jnp.bfloat16)

    num_layers = len(params)
    for i, (wr, wn, b) in enumerate(params):
        is_last = i == num_layers - 1
        cur_fin_p = h.shape[1]
        fout_p = _round_up(wr.shape[1], 128)
        w_comb, b_pad = _prep_layer_params(wr, wn, b, cur_fin_p, fout_p)
        h = sage_conv(h, a_pad, w_comb, b_pad,
                      apply_relu=not is_last,
                      out_dtype=jnp.float32 if is_last else jnp.bfloat16)
        # TODO(synk): F.dropout(p=0.2) only applies in training mode; this
        # forward matches eval-mode semantics (dropout == identity).

    # TODO(synk): for large / sparse graphs replace the dense O(N^2) A_mean
    # matmul with a CSR / padded-neighbor gather kernel (scalar-prefetch
    # offsets in SMEM + manual async copies); the dense path is only a win
    # for small, dense graphs.
    return h[:n, :fout_final]


if __name__ == "__main__":
    key = jax.random.PRNGKey(0)

    N = 256            # number of graph nodes
    IN_C = 64          # in_channels
    HID_C = 128        # hidden_channels
    OUT_C = 32         # out_channels
    NUM_LAYERS = 2
    E = 1024           # number of directed edges

    k_x, k_src, k_dst, k_p = jax.random.split(key, 4)
    x = jax.random.normal(k_x, (N, IN_C), jnp.float32)
    src = jax.random.randint(k_src, (E,), 0, N, jnp.int32)
    dst = jax.random.randint(k_dst, (E,), 0, N, jnp.int32)
    edge_index = jnp.stack([src, dst], axis=0)   # (2, E), PyG convention

    params = init_graphsage_params(k_p, IN_C, HID_C, OUT_C, NUM_LAYERS)

    out = graphsage_forward(x, edge_index, params)
    out = jax.block_until_ready(out)
    assert out.shape == (N, OUT_C)
    print("KERNEL_OK")
</pallas_src>

<mosaic_0001>
module attributes {stable_mosaic.version = 11 : i64} {
  func.func @sage_conv_kernel(%arg0: i32, %arg1: i32, %arg2: memref<256x256xbf16, #tpu.memory_space<vmem>>, %arg3: memref<256x128xbf16, #tpu.memory_space<vmem>>, %arg4: memref<256x128xbf16, #tpu.memory_space<vmem>>, %arg5: memref<256x128xbf16, #tpu.memory_space<vmem>>, %arg6: memref<1x128xf32, #tpu.memory_space<vmem>>, %arg7: memref<256x128xbf16, #tpu.memory_space<vmem>>, %arg8: memref<256x256xf32, #tpu.memory_space<vmem>>) attributes {dimension_semantics = [#tpu.dimension_semantics<parallel>, #tpu.dimension_semantics<arbitrary>], iteration_bounds = array<i64: 1, 1>, scalar_prefetch = 0 : i64, scratch_operands = 1 : i64, tpu.core_type = #tpu.core_type<tc>, window_params = [{transform_indices = @transform_0, window_bounds = array<i64: 256, 256>}, {transform_indices = @transform_1, window_bounds = array<i64: 256, 128>}, {transform_indices = @transform_2, window_bounds = array<i64: 256, 128>}, {pipeline_mode = #tpu.pipeline_mode<synchronous>, transform_indices = @transform_3, window_bounds = array<i64: 256, 128>}, {pipeline_mode = #tpu.pipeline_mode<synchronous>, transform_indices = @transform_4, window_bounds = array<i64: 1, 128>}, {transform_indices = @transform_5, window_bounds = array<i64: 256, 128>}]} {
    %c0 = arith.constant 0 : index
    %c0_0 = arith.constant 0 : index
    %0 = vector.load %arg2[%c0, %c0_0] : memref<256x256xbf16, #tpu.memory_space<vmem>>, vector<256x256xbf16>
    %c0_1 = arith.constant 0 : index
    %c0_2 = arith.constant 0 : index
    %1 = vector.load %arg3[%c0_1, %c0_2] : memref<256x128xbf16, #tpu.memory_space<vmem>>, vector<256x128xbf16>
    %cst = arith.constant dense<0.000000e+00> : vector<256x128xf32>
    %2 = tpu.matmul %0, %1, %cst {dimension_numbers = #tpu.dot_dimension_numbers<[1], [0], [0], [1], [0, 0, 1, 1], [], []>} : vector<256x256xbf16>, vector<256x128xbf16>, vector<256x128xf32> -> vector<256x128xf32>
    %c0_i32 = arith.constant 0 : i32
    %3 = arith.cmpi eq, %arg1, %c0_i32 : i32
    %4 = arith.extui %3 : i1 to i32
    %c0_i32_3 = arith.constant 0 : i32
    %5 = arith.cmpi ne, %4, %c0_i32_3 : i32
    scf.if %5 {
      %c0_8 = arith.constant 0 : index
      %c0_9 = arith.constant 0 : index
      %12 = vector.load %arg4[%c0_8, %c0_9] : memref<256x128xbf16, #tpu.memory_space<vmem>>, vector<256x128xbf16>
      %13 = arith.extf %12 : vector<256x128xbf16> to vector<256x128xf32>
      %c0_10 = arith.constant 0 : index
      %c0_11 = arith.constant 0 : index
      %14 = vector.load %arg8[%c0_10, %c0_11] : memref<256x256xf32, #tpu.memory_space<vmem>>, vector<256x128xf32>
      tpu.vector_store %arg8[%c0_10, %c0_11], %13 {strides = array<i32>} : memref<256x256xf32, #tpu.memory_space<vmem>>, vector<256x128xf32>,
      %c0_12 = arith.constant 0 : index
      %c128 = arith.constant 128 : index
      %15 = vector.load %arg8[%c0_12, %c128] : memref<256x256xf32, #tpu.memory_space<vmem>>, vector<256x128xf32>
      tpu.vector_store %arg8[%c0_12, %c128], %2 {strides = array<i32>} : memref<256x256xf32, #tpu.memory_space<vmem>>, vector<256x128xf32>,
    } else {
    }
    %c0_i32_4 = arith.constant 0 : i32
    %6 = arith.cmpi sgt, %arg1, %c0_i32_4 : i32
    %7 = arith.extui %6 : i1 to i32
    %c0_i32_5 = arith.constant 0 : i32
    %8 = arith.cmpi ne, %7, %c0_i32_5 : i32
    scf.if %8 {
      %c0_8 = arith.constant 0 : index
      %c128 = arith.constant 128 : index
      %12 = vector.load %arg8[%c0_8, %c128] : memref<256x256xf32, #tpu.memory_space<vmem>>, vector<256x128xf32>
      %13 = arith.addf %12, %2 : vector<256x128xf32>
      %c0_9 = arith.constant 0 : index
      %c128_10 = arith.constant 128 : index
      %14 = vector.load %arg8[%c0_9, %c128_10] : memref<256x256xf32, #tpu.memory_space<vmem>>, vector<256x128xf32>
      tpu.vector_store %arg8[%c0_9, %c128_10], %13 {strides = array<i32>} : memref<256x256xf32, #tpu.memory_space<vmem>>, vector<256x128xf32>,
    } else {
    }
    %c0_i32_6 = arith.constant 0 : i32
    %9 = arith.cmpi eq, %arg1, %c0_i32_6 : i32
    %10 = arith.extui %9 : i1 to i32
    %c0_i32_7 = arith.constant 0 : i32
    %11 = arith.cmpi ne, %10, %c0_i32_7 : i32
    scf.if %11 {
      %c0_8 = arith.constant 0 : index
      %c0_9 = arith.constant 0 : index
      %12 = vector.load %arg8[%c0_8, %c0_9] : memref<256x256xf32, #tpu.memory_space<vmem>>, vector<256x256xf32>
      %13 = arith.truncf %12 : vector<256x256xf32> to vector<256x256xbf16>
      %c0_10 = arith.constant 0 : index
      %c0_11 = arith.constant 0 : index
      %14 = vector.load %arg5[%c0_10, %c0_11] : memref<256x128xbf16, #tpu.memory_space<vmem>>, vector<256x128xbf16>
      %cst_12 = arith.constant dense<0.000000e+00> : vector<256x128xf32>
      %15 = tpu.matmul %13, %14, %cst_12 {dimension_numbers = #tpu.dot_dimension_numbers<[1], [0], [0], [1], [0, 0, 1, 1], [], []>} : vector<256x256xbf16>, vector<256x128xbf16>, vector<256x128xf32> -> vector<256x128xf32>
      %c0_13 = arith.constant 0 : index
      %c0_14 = arith.constant 0 : index
      %16 = vector.load %arg6[%c0_13, %c0_14] : memref<1x128xf32, #tpu.memory_space<vmem>>, vector<1x128xf32>
      %17 = vector.broadcast %16 : vector<1x128xf32> to vector<256x128xf32>
      %18 = arith.addf %15, %17 : vector<256x128xf32>
      %cst_15 = arith.constant 0.000000e+00 : f32
      %19 = vector.broadcast %cst_15 : f32 to vector<256x128xf32>
      %20 = arith.maximumf %18, %19 : vector<256x128xf32>
      %21 = arith.truncf %20 : vector<256x128xf32> to vector<256x128xbf16>
      %c0_16 = arith.constant 0 : index
      %c0_17 = arith.constant 0 : index
      %22 = vector.load %arg7[%c0_16, %c0_17] : memref<256x128xbf16, #tpu.memory_space<vmem>>, vector<256x128xbf16>
      tpu.vector_store %arg7[%c0_16, %c0_17], %21 {strides = array<i32>} : memref<256x128xbf16, #tpu.memory_space<vmem>>, vector<256x128xbf16>,
    } else {
    }
    return
  }
  func.func @transform_0(%arg0: i32, %arg1: i32) -> (i32, i32) {
    %c0_i32 = arith.constant 0 : i32
    return %arg0, %arg1 : i32, i32
  }
  func.func @transform_1(%arg0: i32, %arg1: i32) -> (i32, i32) {
    %c0_i32 = arith.constant 0 : i32
    %c0_i32_0 = arith.constant 0 : i32
    return %arg1, %c0_i32 : i32, i32
  }
  func.func @transform_2(%arg0: i32, %arg1: i32) -> (i32, i32) {
    %c0_i32 = arith.constant 0 : i32
    %c0_i32_0 = arith.constant 0 : i32
    return %arg0, %c0_i32 : i32, i32
  }
  func.func @transform_3(%arg0: i32, %arg1: i32) -> (i32, i32) {
    %c0_i32 = arith.constant 0 : i32
    %c0_i32_0 = arith.constant 0 : i32
    %c0_i32_1 = arith.constant 0 : i32
    return %c0_i32, %c0_i32_0 : i32, i32
  }
  func.func @transform_4(%arg0: i32, %arg1: i32) -> (i32, i32) {
    %c0_i32 = arith.constant 0 : i32
    %c0_i32_0 = arith.constant 0 : i32
    %c0_i32_1 = arith.constant 0 : i32
    return %c0_i32, %c0_i32_0 : i32, i32
  }
  func.func @transform_5(%arg0: i32, %arg1: i32) -> (i32, i32) {
    %c0_i32 = arith.constant 0 : i32
    %c0_i32_0 = arith.constant 0 : i32
    return %arg0, %c0_i32 : i32, i32
  }
}

</mosaic_0001>

<bundles_post_ra>
// kernel: tpu_custom_call.1
= control target key start
LH: loop header
LB: loop body
LE: loop exit
PB: predicated region body
PF: predicated region fallthrough
CT: control target
= control target key end

     0   :  { %10 = vsyncpa [#allocation4], 0  ;;  %s2223_s0 = inlined_call_operand.hbm [shape: bf16[256,256], index: 0, kind: input, shape index: {}]   ;;  %s2224_s1 = inlined_call_operand.hbm [shape: bf16[256,128], index: 1, kind: input, shape index: {}]   ;;  %s2225_s2 = inlined_call_operand.hbm [shape: bf16[256,128], index: 2, kind: input, shape index: {}]   ;;  %s2226_s3 = inlined_call_operand.hbm [shape: bf16[256,128], index: 3, kind: input, shape index: {}]   ;;  %s2227_s4 = inlined_call_operand.vmem [shape: f32[1,128], index: 4, kind: input, shape index: {}]   ;;  %s2228_s5 = inlined_call_operand.hbm [shape: bf16[256,128], index: 5, kind: output, shape index: {}]  }
   0x1   :  { %11 = vsyncpa [#allocation7], 0 }
   0x2   :  { %12 = vsyncpa [#allocation10], 0 }
   0x3   :  { %13 = vsyncpa [#allocation5], 0  ;;  %s2120_s18 = smov [#allocation6]  }
   0x4   :  { %s31_s19 = sshll.u32 %s2120_s18, 4  ;;  %s32_s19 = int_to_ptr.vmem [resolvable:$true] %s31_s19 }
   0x5   :  { %s2020_s20 = scalar_lea.vmem %s32_s19, 2048  ;;  %p2025_p1 = scmp.lt.s32.totalorder %s32_s19, %s32_s19 }
   0x6   :  { %p2021_p0 = scmp.ne.s32.totalorder %s32_s19, %s2020_s20  ;;  %p2026_p2 = scmp.lt.s32.totalorder %s2020_s20, %s2020_s20 }
   0x8   :  { %p2027_p3 = por %p2026_p2, %p2025_p1 }
   0xa   :  { %p2028_p4 = pnand %p2027_p3, %p2021_p0 }
   0xc   :  { %2031 = shalt.err (!%p2028_p4)
}
   0xd   :  { %s2121_s21 = smov 64   ;;  %s2122_s22 = smov 4  }
   0xe   :  { %37 = dma.hbm_to_vmem [thread:$0]  %s2224_s1, 2048, %s32_s19, [#allocation7], %s2121_s21, %s2121_s21, %s2122_s22  }
   0xf   :  { %s2123_s25 = smov [#allocation3]  }
  0x10   :  { %s19_s26 = sshll.u32 %s2123_s25, 4  ;;  %s20_s26 = int_to_ptr.vmem [resolvable:$true] %s19_s26 }
  0x11   :  { %s2040_s27 = scalar_lea.vmem %s20_s26, 4096  ;;  %p2045_p6 = scmp.lt.s32.totalorder %s20_s26, %s20_s26 }
  0x12   :  { %p2041_p5 = scmp.ne.s32.totalorder %s20_s26, %s2040_s27  ;;  %p2046_p7 = scmp.lt.s32.totalorder %s2040_s27, %s2040_s27 }
  0x14   :  { %p2047_p8 = por %p2046_p7, %p2045_p6 }
  0x16   :  { %p2048_p9 = pnand %p2047_p8, %p2041_p5 }
  0x18   :  { %2051 = shalt.err (!%p2048_p9)
}
  0x19   :  { %s2124_s28 = smov 128   ;;  %s2125_s29 = smov 8  }
  0x1a   :  { %25 = dma.hbm_to_vmem [thread:$0]  %s2223_s0, 4096, %s20_s26, [#allocation4], %s2124_s28, %s2124_s28, %s2125_s29  }
  0x1b   :  { %s2126_s7 = smov [#allocation8]   ;;  %s2127_s9 = smov [#allocation9]  }
  0x1c   :  { %s43_s8 = sshll.u32 %s2126_s7, 4  ;;  %s55_s1 = sshll.u32 %s2127_s9, 4  ;;  %s44_s8 = int_to_ptr.vmem [resolvable:$true] %s43_s8  ;;  %s56_s1 = int_to_ptr.vmem [resolvable:$true] %s55_s1 }
  0x1d   :  { %s2060_s10 = scalar_lea.vmem %s44_s8, 2048  ;;  %p2065_p11 = scmp.lt.s32.totalorder %s44_s8, %s44_s8 }
  0x1e   :  { %p2061_p10 = scmp.ne.s32.totalorder %s44_s8, %s2060_s10  ;;  %p2066_p12 = scmp.lt.s32.totalorder %s2060_s10, %s2060_s10 }
  0x20   :  { %p2067_p13 = por %p2066_p12, %p2065_p11 }
  0x22   :  { %p2068_p0 = pnand %p2067_p13, %p2061_p10 }
  0x24   :  { %2071 = shalt.err (!%p2068_p0)
}
  0x25   :  { %49 = dma.hbm_to_vmem [thread:$0]  %s2225_s2, 2048, %s44_s8, [#allocation7], %s2121_s21, %s2121_s21, %s2122_s22  }
  0x26   :  { %s2080_s0 = scalar_lea.vmem %s56_s1, 2048  ;;  %p2085_p2 = scmp.lt.s32.totalorder %s56_s1, %s56_s1 }
  0x27   :  { %p2081_p1 = scmp.ne.s32.totalorder %s56_s1, %s2080_s0  ;;  %p2086_p3 = scmp.lt.s32.totalorder %s2080_s0, %s2080_s0 }
  0x29   :  { %p2087_p4 = por %p2086_p3, %p2085_p2 }
  0x2b   :  { %p2088_p5 = pnand %p2087_p4, %p2081_p1 }
  0x2d   :  { %2091 = shalt.err (!%p2088_p5)
}
  0x2e   :  { %61 = dma.hbm_to_vmem [thread:$0]  %s2226_s3, 2048, %s56_s1, [#allocation10], %s2121_s21, %s2121_s21, %s2122_s22  }
  0x2f   :  { %2112 = dma.done.wait [#allocation4], 4096  }
  0x30   :  { %2113 = vsyncadd [#allocation4], 4294963200 }
  0x31   :  { %2114 = dma.done.wait [#allocation7], 4096  }
  0x32   :  { %2115 = vsyncadd [#allocation7], 4294963200 }
  0x33   :  { %2116 = dma.done.wait [#allocation10], 2048  }
  0x34   :  { %2117 = vsyncadd [#allocation10], 4294965248  ;;  %v1932_v0 = vld [vmem:[#allocation6 + $0x78] sm:$0xff]   ;;  %v1934_v2 = vld [vmem:[#allocation6 + $0x70] sm:$0xff]  }
  0x35   :  { %v1933_v1 = vld [vmem:[#allocation6 + $0x38] sm:$0xff]   ;;  %1699 = vmatprep.subr.bf16.mxu0 %v1932_v0  ;;  %v1935_v3 = vld [vmem:[#allocation6 + $0x30] sm:$0xff]   ;;  %v1936_v4 = vld [vmem:[#allocation6 + $0x68] sm:$0xff]  }
  0x36   :  { %1700 = vmatpush3.bf16.msra.mxu0 %v1933_v1  ;;  %v1937_v5 = vld [vmem:[#allocation6 + $0x28] sm:$0xff]   ;;  %v1938_v6 = vld [vmem:[#allocation6 + $0x60] sm:$0xff]   ;;  %v1940_v8 = vld [vmem:[#allocation6 + $0x58] sm:$0xff]  }
  0x37   :  { %1701 = vmatprep.subr.bf16.mxu0 %v1934_v2  ;;  %v1939_v7 = vld [vmem:[#allocation6 + $0x20] sm:$0xff]   ;;  %v1941_v9 = vld [vmem:[#allocation6 + $0x18] sm:$0xff]   ;;  %v1942_v10 = vld [vmem:[#allocation6 + $0x50] sm:$0xff]  }
  0x38   :  { %v1950_v11 = vld [vmem:[#allocation3 + $0x4] ss:$8 sps:$4 sm:$0xff]   ;;  %v1943_v12 = vld [vmem:[#allocation6 + $0x10] sm:$0xff]   ;;  %v1948_v17 = vld [vmem:[#allocation3] ss:$8 sps:$4 sm:$0xff]  }
  0x39   :  { %429 = vmatprep.mubr.bf16.mxu0 %v1950_v11  ;;  %v1944_v13 = vld [vmem:[#allocation6 + $0x48] sm:$0xff]   ;;  %v1946_v15 = vld [vmem:[#allocation6 + $0x40] sm:$0xff]   ;;  %v1951_v18 = vld [vmem:[#allocation3 + $0x14] ss:$8 sps:$4 sm:$0xff]  }
  0x3a   :  { %1702 = vmatpush3.bf16.msra.mxu0 %v1935_v3  ;;  %v1945_v14 = vld [vmem:[#allocation6 + $0x8] sm:$0xff]   ;;  %v1947_v16 = vld [vmem:[#allocation6] sm:$0xff]   ;;  %v1953_v19 = vld [vmem:[#allocation3 + $0x10] ss:$8 sps:$4 sm:$0xff]  }
  0x3b   :  { %1703 = vmatprep.subr.bf16.mxu0 %v1936_v4  ;;  %v1954_v20 = vld [vmem:[#allocation3 + $0x24] ss:$8 sps:$4 sm:$0xff]   ;;  %v1996_v21 = vld [vmem:[#allocation9 + $0x78] sm:$0xff]   ;;  %v1998_v23 = vld [vmem:[#allocation9 + $0x70] sm:$0xff]  }
  0x3c   :  { %v1997_v22 = vld [vmem:[#allocation9 + $0x38] sm:$0xff]   ;;  %1811 = vmatprep.subr.bf16.mxu1 %v1996_v21  ;;  %v1999_v24 = vld [vmem:[#allocation9 + $0x30] sm:$0xff]   ;;  %v2000_v25 = vld [vmem:[#allocation9 + $0x68] sm:$0xff]  }
  0x3d   :  { %1812 = vmatpush3.bf16.msra.mxu1 %v1997_v22  ;;  %v1956_v26 = vld [vmem:[#allocation3 + $0x20] ss:$8 sps:$4 sm:$0xff]   ;;  %v1957_v27 = vld [vmem:[#allocation3 + $0x34] ss:$8 sps:$4 sm:$0xff]   ;;  %v1959_v33 = vld [vmem:[#allocation3 + $0x30] ss:$8 sps:$4 sm:$0xff]  }
  0x3e   :  { %1704 = vmatpush3.bf16.msra.mxu0 %v1937_v5  ;;  %1813 = vmatprep.subr.bf16.mxu1 %v1998_v23  ;;  %v2001_v28 = vld [vmem:[#allocation9 + $0x28] sm:$0xff]   ;;  %v2002_v29 = vld [vmem:[#allocation9 + $0x60] sm:$0xff]   ;;  %v2004_v31 = vld [vmem:[#allocation9 + $0x58] sm:$0xff]  }
  0x3f   :  { %1705 = vmatprep.subr.bf16.mxu0 %v1938_v6  ;;  %v2003_v30 = vld [vmem:[#allocation9 + $0x20] sm:$0xff]   ;;  %v2005_v32 = vld [vmem:[#allocation9 + $0x18] sm:$0xff]   ;;  %v2006_v45 = vld [vmem:[#allocation9 + $0x50] sm:$0xff]  }
  0x40   :  { %v1960_v34 = vld [vmem:[#allocation3 + $0x44] ss:$8 sps:$4 sm:$0xff]   ;;  %v1962_v35 = vld [vmem:[#allocation3 + $0x40] ss:$8 sps:$4 sm:$0xff]   ;;  %v1963_v36 = vld [vmem:[#allocation3 + $0x54] ss:$8 sps:$4 sm:$0xff]  }
  0x41   :  { %1814 = vmatpush3.bf16.msra.mxu1 %v1999_v24  ;;  %v1965_v37 = vld [vmem:[#allocation3 + $0x50] ss:$8 sps:$4 sm:$0xff]   ;;  %v1966_v38 = vld [vmem:[#allocation3 + $0x64] ss:$8 sps:$4 sm:$0xff]   ;;  %v1968_v39 = vld [vmem:[#allocation3 + $0x60] ss:$8 sps:$4 sm:$0xff]  }
  0x42   :  { %1706 = vmatpush3.bf16.msra.mxu0 %v1939_v7  ;;  %1815 = vmatprep.subr.bf16.mxu1 %v2000_v25  ;;  %v1969_v40 = vld [vmem:[#allocation3 + $0x74] ss:$8 sps:$4 sm:$0xff]   ;;  %v1971_v41 = vld [vmem:[#allocation3 + $0x70] ss:$8 sps:$4 sm:$0xff]   ;;  %v1972_v42 = vld [vmem:[#allocation3 + $0x84] ss:$8 sps:$4 sm:$0xff]  }
  0x43   :  { %1707 = vmatprep.subr.bf16.mxu0 %v1940_v8  ;;  %v1974_v43 = vld [vmem:[#allocation3 + $0x80] ss:$8 sps:$4 sm:$0xff]   ;;  %v1975_v44 = vld [vmem:[#allocation3 + $0x94] ss:$8 sps:$4 sm:$0xff]   ;;  %v1977_v49 = vld [vmem:[#allocation3 + $0x90] ss:$8 sps:$4 sm:$0xff]  }
  0x44   :  { %v2007_v46 = vld [vmem:[#allocation9 + $0x10] sm:$0xff]   ;;  %v2008_v47 = vld [vmem:[#allocation9 + $0x48] sm:$0xff]   ;;  %v2010_v51 = vld [vmem:[#allocation9 + $0x40] sm:$0xff]  }
  0x45   :  { %1816 = vmatpush3.bf16.msra.mxu1 %v2001_v28  ;;  %v2009_v48 = vld [vmem:[#allocation9 + $0x8] sm:$0xff]   ;;  %v2011_v52 = vld [vmem:[#allocation9] sm:$0xff]   ;;  %v1981_v54 = vld [vmem:[#allocation3 + $0xb4] ss:$8 sps:$4 sm:$0xff]  }
  0x46   :  { %1708 = vmatpush3.bf16.msra.mxu0 %v1941_v9  ;;  %1817 = vmatprep.subr.bf16.mxu1 %v2002_v29  ;;  %v1978_v50 = vld [vmem:[#allocation3 + $0xa4] ss:$8 sps:$4 sm:$0xff]   ;;  %v1980_v53 = vld [vmem:[#allocation3 + $0xa0] ss:$8 sps:$4 sm:$0xff]   ;;  %v1983_v55 = vld [vmem:[#allocation3 + $0xb0] ss:$8 sps:$4 sm:$0xff]  }
  0x47   :  { %1709 = vmatprep.subr.bf16.mxu0 %v1942_v10  ;;  %v1984_v56 = vld [vmem:[#allocation3 + $0xc4] ss:$8 sps:$4 sm:$0xff]   ;;  %v1986_v57 = vld [vmem:[#allocation3 + $0xc0] ss:$8 sps:$4 sm:$0xff]   ;;  %v1987_v58 = vld [vmem:[#allocation3 + $0xd4] ss:$8 sps:$4 sm:$0xff]  }
  0x48   :  { %v1989_v59 = vld [vmem:[#allocation3 + $0xd0] ss:$8 sps:$4 sm:$0xff]   ;;  %v1990_v60 = vld [vmem:[#allocation3 + $0xe4] ss:$8 sps:$4 sm:$0xff]   ;;  %v1992_v61 = vld [vmem:[#allocation3 + $0xe0] ss:$8 sps:$4 sm:$0xff]  }
  0x49   :  { %1818 = vmatpush3.bf16.msra.mxu1 %v2003_v30  ;;  %v1993_v62 = vld [vmem:[#allocation3 + $0xf4] ss:$8 sps:$4 sm:$0xff]   ;;  %v1995_v63 = vld [vmem:[#allocation3 + $0xf0] ss:$8 sps:$4 sm:$0xff]   ;;  %v1526_v8 = vld [vmem:[#allocation8] sm:$0xff]  }
  0x4a   :  { %1710 = vmatpush3.bf16.msra.mxu0 %v1943_v12  ;;  %1819 = vmatprep.subr.bf16.mxu1 %v2004_v31  ;;  %v1670_v24 = vld [vmem:[#allocation8 + $0x10] sm:$0xff]  }
  0x4b   :  { %1711 = vmatprep.subr.bf16.mxu0 %v1944_v13 }
  0x4d   :  { %1820 = vmatpush3.bf16.msra.mxu1 %v2005_v32  ;;  %v1671_v32 = vld [vmem:[#allocation8 + $0x18] sm:$0xff]  }
  0x4e   :  { %1712 = vmatpush3.bf16.msra.mxu0 %v1945_v14  ;;  %1821 = vmatprep.subr.bf16.mxu1 %v2006_v45 }
  0x4f   :  { %1713 = vmatprep.subr.bf16.mxu0 %v1946_v15 }
  0x51   :  { %1822 = vmatpush3.bf16.msra.mxu1 %v2007_v46 }
  0x52   :  { %1714 = vmatpush3.bf16.msra.mxu0 %v1947_v16  ;;  %1823 = vmatprep.subr.bf16.mxu1 %v2008_v47  ;;  %v1669_v16 = vld [vmem:[#allocation8 + $0x8] sm:$0xff]  }
  0x55   :  { %430 = vmatmul.mubr.bf16.vlgmr.msra.gmra.mxu0 %v1948_v17  ;;  %1824 = vmatpush3.bf16.msra.mxu1 %v2009_v48  ;;  %v1673_v48 = vld [vmem:[#allocation8 + $0x28] sm:$0xff]  }
  0x56   :  { %437 = vmatprep.mubr.bf16.mxu0 %v1951_v18  ;;  %1825 = vmatprep.subr.bf16.mxu1 %v2010_v51 }
  0x59   :  { %1826 = vmatpush3.bf16.msra.mxu1 %v2011_v52 }
  0x5d   :  { %438 = vmatmul.mubr.bf16.gmra.mxu0 %v1953_v19 }
  0x5e   :  { %445 = vmatprep.mubr.bf16.mxu0 %v1954_v20 }
  0x65   :  { %446 = vmatmul.mubr.bf16.gmra.mxu0 %v1956_v26 }
  0x66   :  { %453 = vmatprep.mubr.bf16.mxu0 %v1957_v27 }
  0x6d   :  { %454 = vmatmul.mubr.bf16.gmra.mxu0 %v1959_v33 }
  0x6e   :  { %461 = vmatprep.mubr.bf16.mxu0 %v1960_v34 }
  0x75   :  { %462 = vmatmul.mubr.bf16.gmra.mxu0 %v1962_v35 }
  0x76   :  { %469 = vmatprep.mubr.bf16.mxu0 %v1963_v36 }
  0x7d   :  { %470 = vmatmul.mubr.bf16.gmra.mxu0 %v1965_v37 }
  0x7e   :  { %477 = vmatprep.mubr.bf16.mxu0 %v1966_v38 }
  0x85   :  { %478 = vmatmul.mubr.bf16.gmra.mxu0 %v1968_v39 }
  0x86   :  { %485 = vmatprep.mubr.bf16.mxu0 %v1969_v40  ;;  %v1672_v40 = vld [vmem:[#allocation8 + $0x20] sm:$0xff]  }
  0x8d   :  { %486 = vmatmul.mubr.bf16.gmra.mxu0 %v1971_v41 }
  0x8e   :  { %493 = vmatprep.mubr.bf16.mxu0 %v1972_v42 }
  0x95   :  { %494 = vmatmul.mubr.bf16.gmra.mxu0 %v1974_v43 }
  0x96   :  { %501 = vmatprep.mubr.bf16.mxu0 %v1975_v44 }
  0x9d   :  { %502 = vmatmul.mubr.bf16.gmra.mxu0 %v1977_v49 }
  0x9e   :  { %509 = vmatprep.mubr.bf16.mxu0 %v1978_v50 }
  0xa5   :  { %510 = vmatmul.mubr.bf16.gmra.mxu0 %v1980_v53 }
  0xa6   :  { %517 = vmatprep.mubr.bf16.mxu0 %v1981_v54 }
  0xad   :  { %518 = vmatmul.mubr.bf16.gmra.mxu0 %v1983_v55 }
  0xae   :  { %525 = vmatprep.mubr.bf16.mxu0 %v1984_v56  ;;  %v1674_v56 = vld [vmem:[#allocation8 + $0x30] sm:$0xff]  }
  0xb5   :  { %526 = vmatmul.mubr.bf16.gmra.mxu0 %v1986_v57 }
  0xb6   :  { %533 = vmatprep.mubr.bf16.mxu0 %v1987_v58 }
  0xbd   :  { %534 = vmatmul.mubr.bf16.gmra.mxu0 %v1989_v59 }
  0xbe   :  { %541 = vmatprep.mubr.bf16.mxu0 %v1990_v60 }
  0xc5   :  { %542 = vmatmul.mubr.bf16.gmra.mxu0 %v1992_v61 }
  0xc6   :  { %549 = vmatprep.mubr.bf16.mxu0 %v1993_v62 }
  0xcd   :  { %550 = vmatmul.mubr.bf16.gmra.mxu0 %v1995_v63 }
 0x115   :  { %v1715_v0 = vpop.f32.mrf.mxu0 }
 0x117   :  { %v1716_v1 = vpop.f32.mrf.mxu0 }
 0x118   :  { %v1717_v4 = vadd.f32 %v1716_v1, %v1715_v0  ;;  %v1675_v0 = vld [vmem:[#allocation8 + $0x38] sm:$0xff]  }
 0x119   :  { %v1718_v2 = vpop.f32.mrf.mxu0 }
 0x11b   :  { %v1719_v3 = vpop.f32.mrf.mxu0 }
 0x11c   :  { %v1720_v5 = vadd.f32 %v1719_v3, %v1718_v2 }
 0x11d   :  { %v1721_v6 = vpop.f32.mrf.mxu0 }
 0x11e   :  { %v858_v7 = vpack.c.bf16 %v1720_v5, %v1717_v4 }
 0x11f   :  { %v1722_v9 = vpop.f32.mrf.mxu0 }
 0x120   :  { %1056 = vmatprep.mubr.bf16.mxu1 %v858_v7  ;;  %v1723_v12 = vadd.f32 %v1722_v9, %v1721_v6 }
 0x121   :  { %v1724_v10 = vpop.f32.mrf.mxu0  ;;  %1057 = vmatmul.mubr.bf16.vlgmr.msra.gmra.mxu1 %v1526_v8  ;;  %v1676_v8 = vld [vmem:[#allocation8 + $0x40] sm:$0xff]  }
 0x123   :  { %v1725_v11 = vpop.f32.mrf.mxu0 }
 0x124   :  { %v1726_v13 = vadd.f32 %v1725_v11, %v1724_v10 }
 0x125   :  { %v1727_v14 = vpop.f32.mrf.mxu0 }
 0x126   :  { %v860_v15 = vpack.c.bf16 %v1726_v13, %v1723_v12 }
 0x127   :  { %v1728_v17 = vpop.f32.mrf.mxu0 }
 0x128   :  { %1064 = vmatprep.mubr.bf16.mxu1 %v860_v15  ;;  %v1729_v20 = vadd.f32 %v1728_v17, %v1727_v14 }
 0x129   :  { %v1730_v18 = vpop.f32.mrf.mxu0  ;;  %1065 = vmatmul.mubr.bf16.gmra.mxu1 %v1669_v16  ;;  %v1677_v16 = vld [vmem:[#allocation8 + $0x48] sm:$0xff]  }
 0x12b   :  { %v1731_v19 = vpop.f32.mrf.mxu0 }
 0x12c   :  { %v1732_v21 = vadd.f32 %v1731_v19, %v1730_v18 }
 0x12d   :  { %v1733_v22 = vpop.f32.mrf.mxu0 }
 0x12e   :  { %v862_v23 = vpack.c.bf16 %v1732_v21, %v1729_v20 }
 0x12f   :  { %v1734_v25 = vpop.f32.mrf.mxu0 }
 0x130   :  { %1072 = vmatprep.mubr.bf16.mxu1 %v862_v23  ;;  %v1735_v28 = vadd.f32 %v1734_v25, %v1733_v22 }
 0x131   :  { %v1736_v26 = vpop.f32.mrf.mxu0  ;;  %1073 = vmatmul.mubr.bf16.gmra.mxu1 %v1670_v24  ;;  %v1678_v24 = vld [vmem:[#allocation8 + $0x50] sm:$0xff]  }
 0x133   :  { %v1737_v27 = vpop.f32.mrf.mxu0 }
 0x134   :  { %v1738_v29 = vadd.f32 %v1737_v27, %v1736_v26 }
 0x135   :  { %v1739_v30 = vpop.f32.mrf.mxu0 }
 0x136   :  { %v864_v31 = vpack.c.bf16 %v1738_v29, %v1735_v28 }
 0x137   :  { %v1740_v33 = vpop.f32.mrf.mxu0 }
 0x138   :  { %1080 = vmatprep.mubr.bf16.mxu1 %v864_v31  ;;  %v1741_v36 = vadd.f32 %v1740_v33, %v1739_v30 }
 0x139   :  { %v1742_v34 = vpop.f32.mrf.mxu0  ;;  %1081 = vmatmul.mubr.bf16.gmra.mxu1 %v1671_v32  ;;  %v1679_v32 = vld [vmem:[#allocation8 + $0x58] sm:$0xff]  }
 0x13b   :  { %v1743_v35 = vpop.f32.mrf.mxu0 }
 0x13c   :  { %v1744_v37 = vadd.f32 %v1743_v35, %v1742_v34 }
 0x13d   :  { %v1745_v38 = vpop.f32.mrf.mxu0 }
 0x13e   :  { %v866_v39 = vpack.c.bf16 %v1744_v37, %v1741_v36 }
 0x13f   :  { %v1746_v41 = vpop.f32.mrf.mxu0 }
 0x140   :  { %1088 = vmatprep.mubr.bf16.mxu1 %v866_v39  ;;  %v1747_v44 = vadd.f32 %v1746_v41, %v1745_v38 }
 0x141   :  { %v1748_v42 = vpop.f32.mrf.mxu0  ;;  %1089 = vmatmul.mubr.bf16.gmra.mxu1 %v1672_v40  ;;  %v1680_v40 = vld [vmem:[#allocation8 + $0x60] sm:$0xff]  }
 0x143   :  { %v1749_v43 = vpop.f32.mrf.mxu0 }
 0x144   :  { %v1750_v45 = vadd.f32 %v1749_v43, %v1748_v42 }
 0x145   :  { %v1751_v46 = vpop.f32.mrf.mxu0 }
 0x146   :  { %v868_v47 = vpack.c.bf16 %v1750_v45, %v1747_v44 }
 0x147   :  { %v1752_v49 = vpop.f32.mrf.mxu0 }
 0x148   :  { %1096 = vmatprep.mubr.bf16.mxu1 %v868_v47  ;;  %v1753_v52 = vadd.f32 %v1752_v49, %v1751_v46 }
 0x149   :  { %v1754_v50 = vpop.f32.mrf.mxu0  ;;  %1097 = vmatmul.mubr.bf16.gmra.mxu1 %v1673_v48  ;;  %v1681_v48 = vld [vmem:[#allocation8 + $0x68] sm:$0xff]  }
 0x14b   :  { %v1755_v51 = vpop.f32.mrf.mxu0 }
 0x14c   :  { %v1756_v53 = vadd.f32 %v1755_v51, %v1754_v50 }
 0x14d   :  { %v1757_v54 = vpop.f32.mrf.mxu0 }
 0x14e   :  { %v870_v55 = vpack.c.bf16 %v1756_v53, %v1753_v52 }
 0x14f   :  { %v1758_v57 = vpop.f32.mrf.mxu0 }
 0x150   :  { %1104 = vmatprep.mubr.bf16.mxu1 %v870_v55  ;;  %v1759_v60 = vadd.f32 %v1758_v57, %v1757_v54 }
 0x151   :  { %v1760_v58 = vpop.f32.mrf.mxu0  ;;  %1105 = vmatmul.mubr.bf16.gmra.mxu1 %v1674_v56  ;;  %v1682_v56 = vld [vmem:[#allocation8 + $0x70] sm:$0xff]  }
 0x153   :  { %v1761_v59 = vpop.f32.mrf.mxu0 }
 0x154   :  { %v1762_v61 = vadd.f32 %v1761_v59, %v1760_v58 }
 0x155   :  { %v1763_v62 = vpop.f32.mrf.mxu0 }
 0x156   :  { %v872_v63 = vpack.c.bf16 %v1762_v61, %v1759_v60 }
 0x157   :  { %v1764_v1 = vpop.f32.mrf.mxu0 }
 0x158   :  { %1112 = vmatprep.mubr.bf16.mxu1 %v872_v63  ;;  %v1765_v4 = vadd.f32 %v1764_v1, %v1763_v62  ;;  %v1683_v63 = vld [vmem:[#allocation8 + $0x78] sm:$0xff]  }
 0x159   :  { %v1766_v2 = vpop.f32.mrf.mxu0  ;;  %1113 = vmatmul.mubr.bf16.gmra.mxu1 %v1675_v0 }
 0x15b   :  { %v1767_v3 = vpop.f32.mrf.mxu0 }
 0x15c   :  { %v1768_v5 = vadd.f32 %v1767_v3, %v1766_v2  ;;  %v2183_v3 = vld [vmem:[%s2227_s4] ss:$0 sm:$0xff]  ;;  %s2128_s4 = smov [#allocation11]  }
 0x15d   :  { %v1769_v6 = vpop.f32.mrf.mxu0  ;;  %s1382_s15 = sshll.u32 %s2128_s4, 4  ;;  %s1383_s15 = int_to_ptr.vmem [resolvable:$true] %s1382_s15 }
 0x15e   :  { %v874_v7 = vpack.c.bf16 %v1768_v5, %v1765_v4  ;;  %s2092_s16 = scalar_lea.vmem %s1383_s15, 2048  ;;  %p2097_p7 = scmp.lt.s32.totalorder %s1383_s15, %s1383_s15 }
 0x15f   :  { %v1770_v9 = vpop.f32.mrf.mxu0  ;;  %p2093_p6 = scmp.ne.s32.totalorder %s1383_s15, %s2092_s16  ;;  %p2098_p8 = scmp.lt.s32.totalorder %s2092_s16, %s2092_s16 }
 0x160   :  { %1120 = vmatprep.mubr.bf16.mxu1 %v874_v7  ;;  %v1771_v12 = vadd.f32 %v1770_v9, %v1769_v6 }
 0x161   :  { %v1772_v10 = vpop.f32.mrf.mxu0  ;;  %1121 = vmatmul.mubr.bf16.gmra.mxu1 %v1676_v8  ;;  %p2099_p9 = por %p2098_p8, %p2097_p7 }
 0x163   :  { %v1773_v11 = vpop.f32.mrf.mxu0  ;;  %p2100_p10 = pnand %p2099_p9, %p2093_p6 }
 0x164   :  { %v1774_v13 = vadd.f32 %v1773_v11, %v1772_v10 }
 0x165   :  { %v1775_v14 = vpop.f32.mrf.mxu0 }
 0x166   :  { %v876_v15 = vpack.c.bf16 %v1774_v13, %v1771_v12 }
 0x167   :  { %v1776_v17 = vpop.f32.mrf.mxu0 }
 0x168   :  { %1128 = vmatprep.mubr.bf16.mxu1 %v876_v15  ;;  %v1777_v20 = vadd.f32 %v1776_v17, %v1775_v14 }
 0x169   :  { %v1778_v18 = vpop.f32.mrf.mxu0  ;;  %1129 = vmatmul.mubr.bf16.gmra.mxu1 %v1677_v16 }
 0x16b   :  { %v1779_v19 = vpop.f32.mrf.mxu0 }
 0x16c   :  { %v1780_v21 = vadd.f32 %v1779_v19, %v1778_v18 }
 0x16d   :  { %v1781_v22 = vpop.f32.mrf.mxu0 }
 0x16e   :  { %v878_v23 = vpack.c.bf16 %v1780_v21, %v1777_v20 }
 0x16f   :  { %v1782_v25 = vpop.f32.mrf.mxu0 }
 0x170   :  { %1136 = vmatprep.mubr.bf16.mxu1 %v878_v23  ;;  %v1783_v28 = vadd.f32 %v1782_v25, %v1781_v22 }
 0x171   :  { %v1784_v26 = vpop.f32.mrf.mxu0  ;;  %1137 = vmatmul.mubr.bf16.gmra.mxu1 %v1678_v24 }
 0x173   :  { %v1785_v27 = vpop.f32.mrf.mxu0 }
 0x174   :  { %v1786_v29 = vadd.f32 %v1785_v27, %v1784_v26 }
 0x175   :  { %v1787_v30 = vpop.f32.mrf.mxu0 }
 0x176   :  { %v880_v31 = vpack.c.bf16 %v1786_v29, %v1783_v28 }
 0x177   :  { %v1788_v33 = vpop.f32.mrf.mxu0 }
 0x178   :  { %1144 = vmatprep.mubr.bf16.mxu1 %v880_v31  ;;  %v1789_v36 = vadd.f32 %v1788_v33, %v1787_v30 }
 0x179   :  { %v1790_v34 = vpop.f32.mrf.mxu0  ;;  %1145 = vmatmul.mubr.bf16.gmra.mxu1 %v1679_v32 }
 0x17b   :  { %v1791_v35 = vpop.f32.mrf.mxu0 }
 0x17c   :  { %v1792_v37 = vadd.f32 %v1791_v35, %v1790_v34 }
 0x17d   :  { %v1793_v38 = vpop.f32.mrf.mxu0 }
 0x17e   :  { %v882_v39 = vpack.c.bf16 %v1792_v37, %v1789_v36 }
 0x17f   :  { %v1794_v41 = vpop.f32.mrf.mxu0 }
 0x180   :  { %1152 = vmatprep.mubr.bf16.mxu1 %v882_v39  ;;  %v1795_v44 = vadd.f32 %v1794_v41, %v1793_v38 }
 0x181   :  { %v1796_v42 = vpop.f32.mrf.mxu0  ;;  %1153 = vmatmul.mubr.bf16.gmra.mxu1 %v1680_v40 }
 0x183   :  { %v1797_v43 = vpop.f32.mrf.mxu0 }
 0x184   :  { %v1798_v45 = vadd.f32 %v1797_v43, %v1796_v42 }
 0x185   :  { %v1799_v46 = vpop.f32.mrf.mxu0 }
 0x186   :  { %v884_v47 = vpack.c.bf16 %v1798_v45, %v1795_v44 }
 0x187   :  { %v1800_v49 = vpop.f32.mrf.mxu0 }
 0x188   :  { %1160 = vmatprep.mubr.bf16.mxu1 %v884_v47  ;;  %v1801_v52 = vadd.f32 %v1800_v49, %v1799_v46 }
 0x189   :  { %v1802_v50 = vpop.f32.mrf.mxu0  ;;  %1161 = vmatmul.mubr.bf16.gmra.mxu1 %v1681_v48 }
 0x18b   :  { %v1803_v51 = vpop.f32.mrf.mxu0 }
 0x18c   :  { %v1804_v53 = vadd.f32 %v1803_v51, %v1802_v50 }
 0x18d   :  { %v1805_v54 = vpop.f32.mrf.mxu0 }
 0x18e   :  { %v886_v55 = vpack.c.bf16 %v1804_v53, %v1801_v52 }
 0x18f   :  { %v1806_v57 = vpop.f32.mrf.mxu0 }
 0x190   :  { %1168 = vmatprep.mubr.bf16.mxu1 %v886_v55  ;;  %v1807_v60 = vadd.f32 %v1806_v57, %v1805_v54 }
 0x191   :  { %v1808_v58 = vpop.f32.mrf.mxu0  ;;  %1169 = vmatmul.mubr.bf16.gmra.mxu1 %v1682_v56 }
 0x193   :  { %v1809_v59 = vpop.f32.mrf.mxu0 }
 0x194   :  { %v1810_v61 = vadd.f32 %v1809_v59, %v1808_v58 }
 0x196   :  { %v888_v62 = vpack.c.bf16 %v1810_v61, %v1807_v60 }
 0x198   :  { %1176 = vmatprep.mubr.bf16.mxu1 %v888_v62 }
 0x199   :  { %1177 = vmatmul.mubr.bf16.gmra.mxu1 %v1683_v63 }
 0x1e1   :  { %v1827_v0 = vpop.f32.mrf.mxu1 }
 0x1e3   :  { %v1828_v1 = vpop.f32.mrf.mxu1 }
 0x1e4   :  { %v1829_v2 = vadd.f32 %v1828_v1, %v1827_v0 }
 0x1e5   :  { %v1830_v4 = vpop.f32.mrf.mxu1 }
 0x1e6   :  { %v1059_v6 = vadd.f32 %v1829_v2, %v2183_v3 }
 0x1e7   :  { %v1831_v5 = vpop.f32.mrf.mxu1 }
 0x1e8   :  { %v1832_v7 = vadd.f32 %v1831_v5, %v1830_v4  ;;  %v1185_v11 = vmax.f32 %v1059_v6, 0.0 }
 0x1e9   :  { %v1833_v8 = vpop.f32.mrf.mxu1 }
 0x1ea   :  { %v1062_v9 = vadd.f32 %v1832_v7, %v2183_v3 }
 0x1eb   :  { %v1834_v10 = vpop.f32.mrf.mxu1 }
 0x1ec   :  { %v1186_v12 = vmax.f32 %v1062_v9, 0.0  ;;  %v1835_v13 = vadd.f32 %v1834_v10, %v1833_v8 }
 0x1ed   :  { %v1836_v14 = vpop.f32.mrf.mxu1 }
 0x1ee   :  { %v1592_v15 = vpack.c.bf16 %v1186_v12, %v1185_v11  ;;  %v1067_v17 = vadd.f32 %v1835_v13, %v2183_v3 }
 0x1ef   :  { %v1837_v16 = vpop.f32.mrf.mxu1 }
 0x1f0   :  { %1593 = vst [vmem:[#allocation11] sm:$0xff] %v1592_v15   ;;  %v1838_v18 = vadd.f32 %v1837_v16, %v1836_v14  ;;  %v1187_v22 = vmax.f32 %v1067_v17, 0.0 }
 0x1f1   :  { %v1839_v19 = vpop.f32.mrf.mxu1 }
 0x1f2   :  { %v1070_v20 = vadd.f32 %v1838_v18, %v2183_v3 }
 0x1f3   :  { %v1840_v21 = vpop.f32.mrf.mxu1 }
 0x1f4   :  { %v1188_v23 = vmax.f32 %v1070_v20, 0.0  ;;  %v1841_v24 = vadd.f32 %v1840_v21, %v1839_v19 }
 0x1f5   :  { %v1842_v25 = vpop.f32.mrf.mxu1 }
 0x1f6   :  { %v1597_v26 = vpack.c.bf16 %v1188_v23, %v1187_v22  ;;  %v1075_v28 = vadd.f32 %v1841_v24, %v2183_v3 }
 0x1f7   :  { %v1843_v27 = vpop.f32.mrf.mxu1 }
 0x1f8   :  { %1684 = vst [vmem:[#allocation11 + $0x8] sm:$0xff] %v1597_v26   ;;  %v1844_v29 = vadd.f32 %v1843_v27, %v1842_v25  ;;  %v1189_v33 = vmax.f32 %v1075_v28, 0.0 }
 0x1f9   :  { %v1845_v30 = vpop.f32.mrf.mxu1 }
 0x1fa   :  { %v1078_v31 = vadd.f32 %v1844_v29, %v2183_v3 }
 0x1fb   :  { %v1846_v32 = vpop.f32.mrf.mxu1 }
 0x1fc   :  { %v1190_v34 = vmax.f32 %v1078_v31, 0.0  ;;  %v1847_v35 = vadd.f32 %v1846_v32, %v1845_v30 }
 0x1fd   :  { %v1848_v36 = vpop.f32.mrf.mxu1 }
 0x1fe   :  { %v1602_v37 = vpack.c.bf16 %v1190_v34, %v1189_v33  ;;  %v1083_v39 = vadd.f32 %v1847_v35, %v2183_v3 }
 0x1ff   :  { %v1849_v38 = vpop.f32.mrf.mxu1 }
 0x200   :  { %1685 = vst [vmem:[#allocation11 + $0x10] sm:$0xff] %v1602_v37   ;;  %v1850_v40 = vadd.f32 %v1849_v38, %v1848_v36  ;;  %v1191_v44 = vmax.f32 %v1083_v39, 0.0 }
 0x201   :  { %v1851_v41 = vpop.f32.mrf.mxu1 }
 0x202   :  { %v1086_v42 = vadd.f32 %v1850_v40, %v2183_v3 }
 0x203   :  { %v1852_v43 = vpop.f32.mrf.mxu1 }
 0x204   :  { %v1192_v45 = vmax.f32 %v1086_v42, 0.0  ;;  %v1853_v46 = vadd.f32 %v1852_v43, %v1851_v41 }
 0x205   :  { %v1854_v47 = vpop.f32.mrf.mxu1 }
 0x206   :  { %v1607_v48 = vpack.c.bf16 %v1192_v45, %v1191_v44  ;;  %v1091_v50 = vadd.f32 %v1853_v46, %v2183_v3 }
 0x207   :  { %v1855_v49 = vpop.f32.mrf.mxu1 }
 0x208   :  { %1686 = vst [vmem:[#allocation11 + $0x18] sm:$0xff] %v1607_v48   ;;  %v1856_v51 = vadd.f32 %v1855_v49, %v1854_v47  ;;  %v1193_v55 = vmax.f32 %v1091_v50, 0.0 }
 0x209   :  { %v1857_v52 = vpop.f32.mrf.mxu1 }
 0x20a   :  { %v1094_v53 = vadd.f32 %v1856_v51, %v2183_v3 }
 0x20b   :  { %v1858_v54 = vpop.f32.mrf.mxu1 }
 0x20c   :  { %v1194_v56 = vmax.f32 %v1094_v53, 0.0  ;;  %v1859_v57 = vadd.f32 %v1858_v54, %v1857_v52 }
 0x20d   :  { %v1860_v58 = vpop.f32.mrf.mxu1 }
 0x20e   :  { %v1612_v59 = vpack.c.bf16 %v1194_v56, %v1193_v55  ;;  %v1099_v61 = vadd.f32 %v1859_v57, %v2183_v3 }
 0x20f   :  { %v1861_v60 = vpop.f32.mrf.mxu1 }
 0x210   :  { %1687 = vst [vmem:[#allocation11 + $0x20] sm:$0xff] %v1612_v59   ;;  %v1862_v62 = vadd.f32 %v1861_v60, %v1860_v58  ;;  %v1195_v2 = vmax.f32 %v1099_v61, 0.0 }
 0x211   :  { %v1863_v63 = vpop.f32.mrf.mxu1 }
 0x212   :  { %v1102_v0 = vadd.f32 %v1862_v62, %v2183_v3 }
 0x213   :  { %v1864_v1 = vpop.f32.mrf.mxu1 }
 0x214   :  { %v1196_v4 = vmax.f32 %v1102_v0, 0.0  ;;  %v1865_v5 = vadd.f32 %v1864_v1, %v1863_v63 }
 0x215   :  { %v1866_v6 = vpop.f32.mrf.mxu1 }
 0x216   :  { %v1617_v7 = vpack.c.bf16 %v1196_v4, %v1195_v2  ;;  %v1107_v9 = vadd.f32 %v1865_v5, %v2183_v3 }
 0x217   :  { %v1867_v8 = vpop.f32.mrf.mxu1 }
 0x218   :  { %1688 = vst [vmem:[#allocation11 + $0x28] sm:$0xff] %v1617_v7   ;;  %v1868_v10 = vadd.f32 %v1867_v8, %v1866_v6  ;;  %v1197_v14 = vmax.f32 %v1107_v9, 0.0 }
 0x219   :  { %v1869_v11 = vpop.f32.mrf.mxu1 }
 0x21a   :  { %v1110_v12 = vadd.f32 %v1868_v10, %v2183_v3 }
 0x21b   :  { %v1870_v13 = vpop.f32.mrf.mxu1 }
 0x21c   :  { %v1198_v15 = vmax.f32 %v1110_v12, 0.0  ;;  %v1871_v16 = vadd.f32 %v1870_v13, %v1869_v11 }
 0x21d   :  { %v1872_v17 = vpop.f32.mrf.mxu1 }
 0x21e   :  { %v1622_v18 = vpack.c.bf16 %v1198_v15, %v1197_v14  ;;  %v1115_v20 = vadd.f32 %v1871_v16, %v2183_v3 }
 0x21f   :  { %v1873_v19 = vpop.f32.mrf.mxu1 }
 0x220   :  { %1689 = vst [vmem:[#allocation11 + $0x30] sm:$0xff] %v1622_v18   ;;  %v1874_v21 = vadd.f32 %v1873_v19, %v1872_v17  ;;  %v1199_v25 = vmax.f32 %v1115_v20, 0.0 }
 0x221   :  { %v1875_v22 = vpop.f32.mrf.mxu1 }
 0x222   :  { %v1118_v23 = vadd.f32 %v1874_v21, %v2183_v3 }
 0x223   :  { %v1876_v24 = vpop.f32.mrf.mxu1 }
 0x224   :  { %v1200_v26 = vmax.f32 %v1118_v23, 0.0  ;;  %v1877_v27 = vadd.f32 %v1876_v24, %v1875_v22 }
 0x225   :  { %v1878_v28 = vpop.f32.mrf.mxu1 }
 0x226   :  { %v1627_v29 = vpack.c.bf16 %v1200_v26, %v1199_v25  ;;  %v1123_v31 = vadd.f32 %v1877_v27, %v2183_v3 }
 0x227   :  { %v1879_v30 = vpop.f32.mrf.mxu1 }
 0x228   :  { %1690 = vst [vmem:[#allocation11 + $0x38] sm:$0xff] %v1627_v29   ;;  %v1880_v32 = vadd.f32 %v1879_v30, %v1878_v28  ;;  %v1201_v36 = vmax.f32 %v1123_v31, 0.0 }
 0x229   :  { %v1881_v33 = vpop.f32.mrf.mxu1 }
 0x22a   :  { %v1126_v34 = vadd.f32 %v1880_v32, %v2183_v3 }
 0x22b   :  { %v1882_v35 = vpop.f32.mrf.mxu1 }
 0x22c   :  { %v1202_v37 = vmax.f32 %v1126_v34, 0.0  ;;  %v1883_v38 = vadd.f32 %v1882_v35, %v1881_v33 }
 0x22d   :  { %v1884_v39 = vpop.f32.mrf.mxu1 }
 0x22e   :  { %v1632_v40 = vpack.c.bf16 %v1202_v37, %v1201_v36  ;;  %v1131_v42 = vadd.f32 %v1883_v38, %v2183_v3 }
 0x22f   :  { %v1885_v41 = vpop.f32.mrf.mxu1 }
 0x230   :  { %1691 = vst [vmem:[#allocation11 + $0x40] sm:$0xff] %v1632_v40   ;;  %v1886_v43 = vadd.f32 %v1885_v41, %v1884_v39  ;;  %v1203_v47 = vmax.f32 %v1131_v42, 0.0 }
 0x231   :  { %v1887_v44 = vpop.f32.mrf.mxu1 }
 0x232   :  { %v1134_v45 = vadd.f32 %v1886_v43, %v2183_v3 }
 0x233   :  { %v1888_v46 = vpop.f32.mrf.mxu1 }
 0x234   :  { %v1204_v48 = vmax.f32 %v1134_v45, 0.0  ;;  %v1889_v49 = vadd.f32 %v1888_v46, %v1887_v44 }
 0x235   :  { %v1890_v50 = vpop.f32.mrf.mxu1 }
 0x236   :  { %v1637_v51 = vpack.c.bf16 %v1204_v48, %v1203_v47  ;;  %v1139_v53 = vadd.f32 %v1889_v49, %v2183_v3 }
 0x237   :  { %v1891_v52 = vpop.f32.mrf.mxu1 }
 0x238   :  { %1692 = vst [vmem:[#allocation11 + $0x48] sm:$0xff] %v1637_v51   ;;  %v1892_v54 = vadd.f32 %v1891_v52, %v1890_v50  ;;  %v1205_v58 = vmax.f32 %v1139_v53, 0.0 }
 0x239   :  { %v1893_v55 = vpop.f32.mrf.mxu1 }
 0x23a   :  { %v1142_v56 = vadd.f32 %v1892_v54, %v2183_v3 }
 0x23b   :  { %v1894_v57 = vpop.f32.mrf.mxu1 }
 0x23c   :  { %v1206_v59 = vmax.f32 %v1142_v56, 0.0  ;;  %v1895_v60 = vadd.f32 %v1894_v57, %v1893_v55 }
 0x23d   :  { %v1896_v61 = vpop.f32.mrf.mxu1 }
 0x23e   :  { %v1642_v62 = vpack.c.bf16 %v1206_v59, %v1205_v58  ;;  %v1147_v0 = vadd.f32 %v1895_v60, %v2183_v3 }
 0x23f   :  { %v1897_v63 = vpop.f32.mrf.mxu1 }
 0x240   :  { %1693 = vst [vmem:[#allocation11 + $0x50] sm:$0xff] %v1642_v62   ;;  %v1898_v1 = vadd.f32 %v1897_v63, %v1896_v61  ;;  %v1207_v6 = vmax.f32 %v1147_v0, 0.0 }
 0x241   :  { %v1899_v2 = vpop.f32.mrf.mxu1 }
 0x242   :  { %v1150_v4 = vadd.f32 %v1898_v1, %v2183_v3 }
 0x243   :  { %v1900_v5 = vpop.f32.mrf.mxu1 }
 0x244   :  { %v1208_v7 = vmax.f32 %v1150_v4, 0.0  ;;  %v1901_v8 = vadd.f32 %v1900_v5, %v1899_v2 }
 0x245   :  { %v1902_v9 = vpop.f32.mrf.mxu1 }
 0x246   :  { %v1647_v10 = vpack.c.bf16 %v1208_v7, %v1207_v6  ;;  %v1155_v12 = vadd.f32 %v1901_v8, %v2183_v3 }
 0x247   :  { %v1903_v11 = vpop.f32.mrf.mxu1 }
 0x248   :  { %1694 = vst [vmem:[#allocation11 + $0x58] sm:$0xff] %v1647_v10   ;;  %v1904_v13 = vadd.f32 %v1903_v11, %v1902_v9  ;;  %v1209_v17 = vmax.f32 %v1155_v12, 0.0 }
 0x249   :  { %v1905_v14 = vpop.f32.mrf.mxu1 }
 0x24a   :  { %v1158_v15 = vadd.f32 %v1904_v13, %v2183_v3 }
 0x24b   :  { %v1906_v16 = vpop.f32.mrf.mxu1 }
 0x24c   :  { %v1210_v18 = vmax.f32 %v1158_v15, 0.0  ;;  %v1907_v19 = vadd.f32 %v1906_v16, %v1905_v14 }
 0x24d   :  { %v1908_v20 = vpop.f32.mrf.mxu1 }
 0x24e   :  { %v1652_v21 = vpack.c.bf16 %v1210_v18, %v1209_v17  ;;  %v1163_v23 = vadd.f32 %v1907_v19, %v2183_v3 }
 0x24f   :  { %v1909_v22 = vpop.f32.mrf.mxu1 }
 0x250   :  { %1695 = vst [vmem:[#allocation11 + $0x60] sm:$0xff] %v1652_v21   ;;  %v1910_v24 = vadd.f32 %v1909_v22, %v1908_v20  ;;  %v1211_v28 = vmax.f32 %v1163_v23, 0.0 }
 0x251   :  { %v1911_v25 = vpop.f32.mrf.mxu1 }
 0x252   :  { %v1166_v26 = vadd.f32 %v1910_v24, %v2183_v3 }
 0x253   :  { %v1912_v27 = vpop.f32.mrf.mxu1 }
 0x254   :  { %v1212_v29 = vmax.f32 %v1166_v26, 0.0  ;;  %v1913_v30 = vadd.f32 %v1912_v27, %v1911_v25 }
 0x255   :  { %v1914_v31 = vpop.f32.mrf.mxu1 }
 0x256   :  { %v1657_v32 = vpack.c.bf16 %v1212_v29, %v1211_v28  ;;  %v1171_v34 = vadd.f32 %v1913_v30, %v2183_v3 }
 0x257   :  { %v1915_v33 = vpop.f32.mrf.mxu1 }
 0x258   :  { %1696 = vst [vmem:[#allocation11 + $0x68] sm:$0xff] %v1657_v32   ;;  %v1916_v35 = vadd.f32 %v1915_v33, %v1914_v31  ;;  %v1213_v39 = vmax.f32 %v1171_v34, 0.0 }
 0x259   :  { %v1917_v36 = vpop.f32.mrf.mxu1 }
 0x25a   :  { %v1174_v37 = vadd.f32 %v1916_v35, %v2183_v3 }
 0x25b   :  { %v1918_v38 = vpop.f32.mrf.mxu1 }
 0x25c   :  { %v1214_v40 = vmax.f32 %v1174_v37, 0.0  ;;  %v1919_v41 = vadd.f32 %v1918_v38, %v1917_v36 }
 0x25d   :  { %v1920_v42 = vpop.f32.mrf.mxu1 }
 0x25e   :  { %v1662_v43 = vpack.c.bf16 %v1214_v40, %v1213_v39  ;;  %v1179_v45 = vadd.f32 %v1919_v41, %v2183_v3 }
 0x25f   :  { %v1921_v44 = vpop.f32.mrf.mxu1 }
 0x260   :  { %1697 = vst [vmem:[#allocation11 + $0x70] sm:$0xff] %v1662_v43   ;;  %v1922_v46 = vadd.f32 %v1921_v44, %v1920_v42  ;;  %v1215_v48 = vmax.f32 %v1179_v45, 0.0 }
 0x262   :  { %v1182_v47 = vadd.f32 %v1922_v46, %v2183_v3 }
 0x264   :  { %v1216_v49 = vmax.f32 %v1182_v47, 0.0 }
 0x266   :  { %v1667_v50 = vpack.c.bf16 %v1216_v49, %v1215_v48 }
 0x268   :  { %1698 = vst [vmem:[#allocation11 + $0x78] sm:$0xff] %v1667_v50  }
 0x269   :  { %2103 = shalt.err (!%p2100_p10)
}
 0x26a   :  { %1388 = dma.vmem_to_hbm [thread:$0]  %s1383_s15, 2048, %s2228_s5, [#allocation5], %s2121_s21, %s2121_s21, %s2122_s22  }
 0x26b   :  { %2118 = dma.done.wait [#allocation5], 2048  }
 0x26c   :  { %2119 = vsyncadd [#allocation5], 4294965248 }
 0x26d   :  { %1392 = vsyncpa [#allocation4], 1 }
 0x26e   :  { %1393 = vsyncpa [#allocation7], 1 }
 0x26f   :  { %1394 = vsyncpa [#allocation10], 1 }
 0x270   :  { %1395 = vsyncpa [#allocation5], 1 }

</bundles_post_ra>
